<compile_context>
chip_gen: v5e
topology: v5e:2x2
jax: 0.10.0
libtpu: 0.0.40
codegen_flags: <defaults>
</compile_context>

<pallas_src>
import functools

import jax
import jax.numpy as jnp
from jax import lax
from jax.experimental import pallas as pl
from jax.experimental.pallas import tpu as pltpu

_LANES = 128


def _cdiv(a, b):
    return (a + b - 1) // b


def _round_up(x, m):
    return _cdiv(x, m) * m


def mlp_softmax_kernel(idx_ref, t_ref, b1_ref, w2_ref, b2_ref, o_ref,
                       *, window_size, vocab_size, pack):
    """One batch tile: fused embedding-gather + Linear -> tanh -> Linear -> softmax.

    idx_ref : (tile_b, window_size) int32 token ids
    t_ref   : (window_size*vocab_size, hidden) bf16 fused table (E @ W1_w stacked)
    b1_ref  : (1, hidden) f32
    w2_ref  : (hidden, out) f32
    b2_ref  : (1, out) f32
    o_ref   : pack>1 -> (tile_b//pack, pack*out) f32 lane-dense packed softmax
              pack==1 -> (tile_b, out) f32
    """
    tile_b = idx_ref.shape[0]
    cols = t_ref.shape[0]                       # window_size * vocab_size
    output_size = w2_ref.shape[1]

    idx = idx_ref[...]                                               # (tile_b, W)
    lane = lax.broadcasted_iota(jnp.int32, (tile_b, cols), 1)

    # Combined one-hot: column c = w*vocab + v is 1 iff idx[:, w] == v.
    onehot = jnp.zeros((tile_b, cols), jnp.float32)
    for w in range(window_size):                                     # static unroll
        onehot = onehot + (idx[:, w:w + 1] + (w * vocab_size) == lane).astype(jnp.float32)
    onehot = onehot.astype(jnp.bfloat16)                             # exact (0/1)

    # Fused embedding gather + first Linear: one lane-dense K=cols MXU matmul.
    acc = jnp.dot(onehot, t_ref[...], preferred_element_type=jnp.float32)
    h = jnp.tanh(acc + b1_ref[...])                                  # (tile_b, hidden)
    logits = jnp.dot(h, w2_ref[...], preferred_element_type=jnp.float32) + b2_ref[...]

    # Numerically stable softmax over dim=1.
    m = jnp.max(logits, axis=-1, keepdims=True)
    e = jnp.exp(logits - m)
    denom = jnp.sum(e, axis=-1, keepdims=True)
    probs = e * pl.reciprocal(denom, approx=True)                    # (tile_b, out)

    if pack > 1:
        # Lane-dense packed store: lane block j holds batch rows [j*rb, (j+1)*rb).
        rb = tile_b // pack
        o_ref[...] = jnp.concatenate(
            [probs[j * rb:(j + 1) * rb, :] for j in range(pack)], axis=-1)
    else:
        o_ref[...] = probs


def model_forward(x_idx, emb_table, w1, b1, w2, b2, *, tile_target=2048):
    """x_idx: int32 (batch, window_size) token indices."""
    batch, window_size = x_idx.shape
    vocab_size, embedding_length = emb_table.shape
    input_dim = window_size * embedding_length
    hidden_size = w1.shape[1]
    output_size = w2.shape[1]
    assert w1.shape[0] == input_dim

    # Fused gather table: T[w*vocab + v, :] = E[v, :] @ W1[w*E:(w+1)*E, :]  (bf16).
    w1r = w1.reshape(window_size, embedding_length, hidden_size)
    fused_t = jnp.einsum('ve,weh->wvh', emb_table, w1r,
                         preferred_element_type=jnp.float32)
    fused_t = fused_t.reshape(window_size * vocab_size, hidden_size).astype(jnp.bfloat16)

    # Output packing factor: pack rows so stored rows are 128 lanes wide.
    pack = _LANES // output_size if _LANES % output_size == 0 else 1

    # Batch tiling: tile_b multiple of max(8, pack*8) keeps the packed output
    # block (8,128)-aligned; an even grid (>1) splits evenly across v7x's 2 TCs.
    align = max(8, pack * 8)
    if batch <= tile_target:
        n_tiles = 1
    else:
        n_tiles = 2 * _cdiv(batch, 2 * tile_target)
    tile_b = _round_up(_cdiv(batch, n_tiles), align)
    padded = n_tiles * tile_b
    if padded != batch:
        x_idx = jnp.pad(x_idx, ((0, padded - batch), (0, 0)))

    kernel = functools.partial(mlp_softmax_kernel, window_size=window_size,
                               vocab_size=vocab_size, pack=pack)

    if pack > 1:
        out_shape = jax.ShapeDtypeStruct((padded // pack, pack * output_size), jnp.float32)
        out_spec = pl.BlockSpec((tile_b // pack, pack * output_size), lambda i: (i, 0))
    else:
        out_shape = jax.ShapeDtypeStruct((padded, output_size), jnp.float32)
        out_spec = pl.BlockSpec((tile_b, output_size), lambda i: (i, 0))

    out = pl.pallas_call(
        kernel,
        out_shape=out_shape,
        grid=(n_tiles,),
        in_specs=[
            pl.BlockSpec((tile_b, window_size), lambda i: (i, 0)),                    # token ids
            pl.BlockSpec((window_size * vocab_size, hidden_size), lambda i: (0, 0)),  # fused T (resident)
            pl.BlockSpec((1, hidden_size), lambda i: (0, 0)),                         # b1
            pl.BlockSpec((hidden_size, output_size), lambda i: (0, 0)),               # W2 (resident)
            pl.BlockSpec((1, output_size), lambda i: (0, 0)),                         # b2
        ],
        out_specs=out_spec,
        compiler_params=pltpu.CompilerParams(
            dimension_semantics=("parallel",),
        ),
    )(x_idx, fused_t, b1, w2, b2)

    if pack > 1:
        rb = tile_b // pack
        out = out.reshape(n_tiles, rb, pack, output_size)
        out = out.transpose(0, 2, 1, 3).reshape(padded, output_size)
    return out[:batch]


def reference_forward(x_idx, emb_table, w1, b1, w2, b2):
    input_dim = x_idx.shape[1] * emb_table.shape[1]
    x = jnp.take(emb_table, x_idx, axis=0).reshape(-1, input_dim)
    h = jnp.tanh(x @ w1 + b1)
    logits = h @ w2 + b2
    return jax.nn.softmax(logits, axis=1)


if __name__ == "__main__":
    # Small shapes consistent with the module.
    vocab_size = 32
    embedding_length = 16
    window_size = 4
    hidden_size = 32
    output_size = 8
    batch = 8
    input_dim = window_size * embedding_length

    key = jax.random.PRNGKey(0)
    k_emb, k_w1, k_b1, k_w2, k_b2, k_x, k_x2 = jax.random.split(key, 7)

    # Deterministic parameter init (mirrors nn.Embedding uniform(-1,1) and
    # nn.Linear default uniform(-1/sqrt(fan_in), 1/sqrt(fan_in))).
    emb_table = jax.random.uniform(
        k_emb, (vocab_size, embedding_length), jnp.float32, -1.0, 1.0
    )
    lim1 = 1.0 / jnp.sqrt(jnp.float32(input_dim))
    w1 = jax.random.uniform(k_w1, (input_dim, hidden_size), jnp.float32, -lim1, lim1)
    b1 = jax.random.uniform(k_b1, (1, hidden_size), jnp.float32, -lim1, lim1)
    lim2 = 1.0 / jnp.sqrt(jnp.float32(hidden_size))
    w2 = jax.random.uniform(k_w2, (hidden_size, output_size), jnp.float32, -lim2, lim2)
    b2 = jax.random.uniform(k_b2, (1, output_size), jnp.float32, -lim2, lim2)

    # --- small batch (typical toy use) ---
    x_idx = jax.random.randint(k_x, (batch, window_size), 0, vocab_size, jnp.int32)
    out = model_forward(x_idx, emb_table, w1, b1, w2, b2)
    out = jax.block_until_ready(out)
    ref = reference_forward(x_idx, emb_table, w1, b1, w2, b2)
    assert out.shape == (batch, output_size)
    assert jnp.allclose(jnp.sum(out, axis=1), 1.0, atol=5e-3)
    assert jnp.allclose(out, ref, rtol=5e-3, atol=5e-3)

    # --- larger, non-multiple batch: exercises the even multi-tile grid,
    # padding, and the packed-output unpack path ---
    big_batch = 4100
    x_idx_big = jax.random.randint(
        k_x2, (big_batch, window_size), 0, vocab_size, jnp.int32
    )
    out_big = model_forward(x_idx_big, emb_table, w1, b1, w2, b2, tile_target=2048)
    out_big = jax.block_until_ready(out_big)
    ref_big = reference_forward(x_idx_big, emb_table, w1, b1, w2, b2)
    assert out_big.shape == (big_batch, output_size)
    assert jnp.allclose(jnp.sum(out_big, axis=1), 1.0, atol=5e-3)
    assert jnp.allclose(out_big, ref_big, rtol=5e-3, atol=5e-3)

    print("KERNEL_OK")
</pallas_src>

<mosaic_0001>
module attributes {stable_mosaic.version = 11 : i64} {
  func.func @mlp_softmax_kernel(%arg0: i32, %arg1: memref<128x4xi32, #tpu.memory_space<vmem>>, %arg2: memref<128x32xbf16, #tpu.memory_space<vmem>>, %arg3: memref<1x32xf32, #tpu.memory_space<vmem>>, %arg4: memref<32x8xf32, #tpu.memory_space<vmem>>, %arg5: memref<1x8xf32, #tpu.memory_space<vmem>>, %arg6: memref<8x128xf32, #tpu.memory_space<vmem>>) attributes {dimension_semantics = [#tpu.dimension_semantics<parallel>], iteration_bounds = array<i64: 1>, scalar_prefetch = 0 : i64, scratch_operands = 0 : i64, tpu.core_type = #tpu.core_type<tc>, window_params = [{transform_indices = @transform_0, window_bounds = array<i64: 128, 4>}, {pipeline_mode = #tpu.pipeline_mode<synchronous>, transform_indices = @transform_1, window_bounds = array<i64: 128, 32>}, {pipeline_mode = #tpu.pipeline_mode<synchronous>, transform_indices = @transform_2, window_bounds = array<i64: 1, 32>}, {pipeline_mode = #tpu.pipeline_mode<synchronous>, transform_indices = @transform_3, window_bounds = array<i64: 32, 8>}, {pipeline_mode = #tpu.pipeline_mode<synchronous>, transform_indices = @transform_4, window_bounds = array<i64: 1, 8>}, {transform_indices = @transform_5, window_bounds = array<i64: 8, 128>}]} {
    %c0 = arith.constant 0 : index
    %c0_0 = arith.constant 0 : index
    %0 = vector.load %arg1[%c0, %c0_0] : memref<128x4xi32, #tpu.memory_space<vmem>>, vector<128x4xi32>
    %1 = tpu.iota {dimensions = array<i32: 1>} : vector<128x128xi32>
    %cst = arith.constant 0.000000e+00 : f32
    %2 = vector.broadcast %cst : f32 to vector<128x128xf32>
    %3 = vector.extract_strided_slice %0 {offsets = [0, 0], sizes = [128, 1], strides = [1, 1]} : vector<128x4xi32> to vector<128x1xi32>
    %c0_i32 = arith.constant 0 : i32
    %4 = vector.broadcast %c0_i32 : i32 to vector<128x1xi32>
    %5 = arith.addi %3, %4 : vector<128x1xi32>
    %6 = vector.broadcast %5 : vector<128x1xi32> to vector<128x128xi32>
    %7 = arith.cmpi eq, %6, %1 : vector<128x128xi32>
    %8 = arith.extui %7 : vector<128x128xi1> to vector<128x128xi32>
    %9 = arith.sitofp %8 : vector<128x128xi32> to vector<128x128xf32>
    %10 = arith.addf %2, %9 : vector<128x128xf32>
    %11 = vector.extract_strided_slice %0 {offsets = [0, 1], sizes = [128, 1], strides = [1, 1]} : vector<128x4xi32> to vector<128x1xi32>
    %c32_i32 = arith.constant 32 : i32
    %12 = vector.broadcast %c32_i32 : i32 to vector<128x1xi32>
    %13 = arith.addi %11, %12 : vector<128x1xi32>
    %14 = vector.broadcast %13 : vector<128x1xi32> to vector<128x128xi32>
    %15 = arith.cmpi eq, %14, %1 : vector<128x128xi32>
    %16 = arith.extui %15 : vector<128x128xi1> to vector<128x128xi32>
    %17 = arith.sitofp %16 : vector<128x128xi32> to vector<128x128xf32>
    %18 = arith.addf %10, %17 : vector<128x128xf32>
    %19 = vector.extract_strided_slice %0 {offsets = [0, 2], sizes = [128, 1], strides = [1, 1]} : vector<128x4xi32> to vector<128x1xi32>
    %c64_i32 = arith.constant 64 : i32
    %20 = vector.broadcast %c64_i32 : i32 to vector<128x1xi32>
    %21 = arith.addi %19, %20 : vector<128x1xi32>
    %22 = vector.broadcast %21 : vector<128x1xi32> to vector<128x128xi32>
    %23 = arith.cmpi eq, %22, %1 : vector<128x128xi32>
    %24 = arith.extui %23 : vector<128x128xi1> to vector<128x128xi32>
    %25 = arith.sitofp %24 : vector<128x128xi32> to vector<128x128xf32>
    %26 = arith.addf %18, %25 : vector<128x128xf32>
    %27 = vector.extract_strided_slice %0 {offsets = [0, 3], sizes = [128, 1], strides = [1, 1]} : vector<128x4xi32> to vector<128x1xi32>
    %c96_i32 = arith.constant 96 : i32
    %28 = vector.broadcast %c96_i32 : i32 to vector<128x1xi32>
    %29 = arith.addi %27, %28 : vector<128x1xi32>
    %30 = vector.broadcast %29 : vector<128x1xi32> to vector<128x128xi32>
    %31 = arith.cmpi eq, %30, %1 : vector<128x128xi32>
    %32 = arith.extui %31 : vector<128x128xi1> to vector<128x128xi32>
    %33 = arith.sitofp %32 : vector<128x128xi32> to vector<128x128xf32>
    %34 = arith.addf %26, %33 : vector<128x128xf32>
    %35 = arith.truncf %34 : vector<128x128xf32> to vector<128x128xbf16>
    %c0_1 = arith.constant 0 : index
    %c0_2 = arith.constant 0 : index
    %36 = vector.load %arg2[%c0_1, %c0_2] : memref<128x32xbf16, #tpu.memory_space<vmem>>, vector<128x32xbf16>
    %cst_3 = arith.constant dense<0.000000e+00> : vector<128x32xf32>
    %37 = tpu.matmul %35, %36, %cst_3 {dimension_numbers = #tpu.dot_dimension_numbers<[1], [0], [0], [1], [0, 0, 1, 1], [], []>} : vector<128x128xbf16>, vector<128x32xbf16>, vector<128x32xf32> -> vector<128x32xf32>
    %c0_4 = arith.constant 0 : index
    %c0_5 = arith.constant 0 : index
    %38 = vector.load %arg3[%c0_4, %c0_5] : memref<1x32xf32, #tpu.memory_space<vmem>>, vector<1x32xf32>
    %39 = vector.broadcast %38 : vector<1x32xf32> to vector<128x32xf32>
    %40 = arith.addf %37, %39 : vector<128x32xf32>
    %41 = math.tanh %40 : vector<128x32xf32>
    %c0_6 = arith.constant 0 : index
    %c0_7 = arith.constant 0 : index
    %42 = vector.load %arg4[%c0_6, %c0_7] : memref<32x8xf32, #tpu.memory_space<vmem>>, vector<32x8xf32>
    %cst_8 = arith.constant dense<0.000000e+00> : vector<128x8xf32>
    %43 = tpu.matmul %41, %42, %cst_8 {dimension_numbers = #tpu.dot_dimension_numbers<[1], [0], [0], [1], [0, 0, 1, 1], [], []>} : vector<128x32xf32>, vector<32x8xf32>, vector<128x8xf32> -> vector<128x8xf32>
    %c0_9 = arith.constant 0 : index
    %c0_10 = arith.constant 0 : index
    %44 = vector.load %arg5[%c0_9, %c0_10] : memref<1x8xf32, #tpu.memory_space<vmem>>, vector<1x8xf32>
    %45 = vector.broadcast %44 : vector<1x8xf32> to vector<128x8xf32>
    %46 = arith.addf %43, %45 : vector<128x8xf32>
    %cst_11 = arith.constant dense<0xFF800000> : vector<128xf32>
    %47 = vector.multi_reduction <maximumf>, %46, %cst_11 [1] : vector<128x8xf32> to vector<128xf32>
    %48 = vector.shape_cast %47 : vector<128xf32> to vector<128x1xf32>
    %49 = vector.broadcast %48 : vector<128x1xf32> to vector<128x8xf32>
    %50 = arith.subf %46, %49 : vector<128x8xf32>
    %51 = math.exp %50 : vector<128x8xf32>
    %cst_12 = arith.constant dense<0.000000e+00> : vector<128xf32>
    %52 = vector.multi_reduction <add>, %51, %cst_12 [1] : vector<128x8xf32> to vector<128xf32>
    %53 = vector.shape_cast %52 : vector<128xf32> to vector<128x1xf32>
    %54 = tpu.reciprocal %53 {approx = true} : vector<128x1xf32> -> vector<128x1xf32>
    %55 = vector.broadcast %54 : vector<128x1xf32> to vector<128x8xf32>
    %56 = arith.mulf %51, %55 : vector<128x8xf32>
    %57 = vector.extract_strided_slice %56 {offsets = [0, 0], sizes = [8, 8], strides = [1, 1]} : vector<128x8xf32> to vector<8x8xf32>
    %58 = vector.extract_strided_slice %56 {offsets = [8, 0], sizes = [8, 8], strides = [1, 1]} : vector<128x8xf32> to vector<8x8xf32>
    %59 = vector.extract_strided_slice %56 {offsets = [16, 0], sizes = [8, 8], strides = [1, 1]} : vector<128x8xf32> to vector<8x8xf32>
    %60 = vector.extract_strided_slice %56 {offsets = [24, 0], sizes = [8, 8], strides = [1, 1]} : vector<128x8xf32> to vector<8x8xf32>
    %61 = vector.extract_strided_slice %56 {offsets = [32, 0], sizes = [8, 8], strides = [1, 1]} : vector<128x8xf32> to vector<8x8xf32>
    %62 = vector.extract_strided_slice %56 {offsets = [40, 0], sizes = [8, 8], strides = [1, 1]} : vector<128x8xf32> to vector<8x8xf32>
    %63 = vector.extract_strided_slice %56 {offsets = [48, 0], sizes = [8, 8], strides = [1, 1]} : vector<128x8xf32> to vector<8x8xf32>
    %64 = vector.extract_strided_slice %56 {offsets = [56, 0], sizes = [8, 8], strides = [1, 1]} : vector<128x8xf32> to vector<8x8xf32>
    %65 = vector.extract_strided_slice %56 {offsets = [64, 0], sizes = [8, 8], strides = [1, 1]} : vector<128x8xf32> to vector<8x8xf32>
    %66 = vector.extract_strided_slice %56 {offsets = [72, 0], sizes = [8, 8], strides = [1, 1]} : vector<128x8xf32> to vector<8x8xf32>
    %67 = vector.extract_strided_slice %56 {offsets = [80, 0], sizes = [8, 8], strides = [1, 1]} : vector<128x8xf32> to vector<8x8xf32>
    %68 = vector.extract_strided_slice %56 {offsets = [88, 0], sizes = [8, 8], strides = [1, 1]} : vector<128x8xf32> to vector<8x8xf32>
    %69 = vector.extract_strided_slice %56 {offsets = [96, 0], sizes = [8, 8], strides = [1, 1]} : vector<128x8xf32> to vector<8x8xf32>
    %70 = vector.extract_strided_slice %56 {offsets = [104, 0], sizes = [8, 8], strides = [1, 1]} : vector<128x8xf32> to vector<8x8xf32>
    %71 = vector.extract_strided_slice %56 {offsets = [112, 0], sizes = [8, 8], strides = [1, 1]} : vector<128x8xf32> to vector<8x8xf32>
    %72 = vector.extract_strided_slice %56 {offsets = [120, 0], sizes = [8, 8], strides = [1, 1]} : vector<128x8xf32> to vector<8x8xf32>
    %73 = tpu.concatenate %57, %58, %59, %60, %61, %62, %63, %64, %65, %66, %67, %68, %69, %70, %71, %72 in 1 : vector<8x8xf32>, vector<8x8xf32>, vector<8x8xf32>, vector<8x8xf32>, vector<8x8xf32>, vector<8x8xf32>, vector<8x8xf32>, vector<8x8xf32>, vector<8x8xf32>, vector<8x8xf32>, vector<8x8xf32>, vector<8x8xf32>, vector<8x8xf32>, vector<8x8xf32>, vector<8x8xf32>, vector<8x8xf32> -> vector<8x128xf32>
    %c0_13 = arith.constant 0 : index
    %c0_14 = arith.constant 0 : index
    %74 = vector.load %arg6[%c0_13, %c0_14] : memref<8x128xf32, #tpu.memory_space<vmem>>, vector<8x128xf32>
    tpu.vector_store %arg6[%c0_13, %c0_14], %73 {strides = array<i32>} : memref<8x128xf32, #tpu.memory_space<vmem>>, vector<8x128xf32>,
    return
  }
  func.func @transform_0(%arg0: i32) -> (i32, i32) {
    %c0_i32 = arith.constant 0 : i32
    %c0_i32_0 = arith.constant 0 : i32
    return %arg0, %c0_i32 : i32, i32
  }
  func.func @transform_1(%arg0: i32) -> (i32, i32) {
    %c0_i32 = arith.constant 0 : i32
    %c0_i32_0 = arith.constant 0 : i32
    %c0_i32_1 = arith.constant 0 : i32
    return %c0_i32, %c0_i32_0 : i32, i32
  }
  func.func @transform_2(%arg0: i32) -> (i32, i32) {
    %c0_i32 = arith.constant 0 : i32
    %c0_i32_0 = arith.constant 0 : i32
    %c0_i32_1 = arith.constant 0 : i32
    return %c0_i32, %c0_i32_0 : i32, i32
  }
  func.func @transform_3(%arg0: i32) -> (i32, i32) {
    %c0_i32 = arith.constant 0 : i32
    %c0_i32_0 = arith.constant 0 : i32
    %c0_i32_1 = arith.constant 0 : i32
    return %c0_i32, %c0_i32_0 : i32, i32
  }
  func.func @transform_4(%arg0: i32) -> (i32, i32) {
    %c0_i32 = arith.constant 0 : i32
    %c0_i32_0 = arith.constant 0 : i32
    %c0_i32_1 = arith.constant 0 : i32
    return %c0_i32, %c0_i32_0 : i32, i32
  }
  func.func @transform_5(%arg0: i32) -> (i32, i32) {
    %c0_i32 = arith.constant 0 : i32
    %c0_i32_0 = arith.constant 0 : i32
    return %arg0, %c0_i32 : i32, i32
  }
}

</mosaic_0001>

<bundles_post_ra>
// kernel: tpu_custom_call.1
= control target key start
LH: loop header
LB: loop body
LE: loop exit
PB: predicated region body
PF: predicated region fallthrough
CT: control target
= control target key end

     0   :  { %v1412_v1 = vmov 0   ;;  %v1413_v2 = vmov 1   ;;  %v1414_v5 = vmov 2   ;;  %s2053_s0 = inlined_call_operand.vmem [shape: s32[128,4], index: 0, kind: input, shape index: {}]   ;;  %s2054_s1 = inlined_call_operand.vmem [shape: bf16[128,32], index: 1, kind: input, shape index: {}]   ;;  %s2055_s2 = inlined_call_operand.vmem [shape: f32[1,32], index: 2, kind: input, shape index: {}]   ;;  %s2056_s3 = inlined_call_operand.vmem [shape: f32[32,8], index: 3, kind: input, shape index: {}]   ;;  %s2057_s4 = inlined_call_operand.vmem [shape: f32[1,8], index: 4, kind: input, shape index: {}]   ;;  %s2058_s5 = inlined_call_operand.hbm [shape: f32[8,128], index: 5, kind: output, shape index: {}]  }
   0x1   :  { %v21_v0 = vld [vmem:[%s2053_s0] sm:$0xff]  ;;  %1233 = vset.pattern.permute.xlu0 %v1412_v1  ;;  %1234 = vset.pattern.permute.xlu1 %v1413_v2  ;;  %v22_v6 = vld [vmem:[%s2053_s0 + $0x8] sm:$0xff] }
   0x2   :  { %v151_v3 = vadd.s32 32, %v21_v0  ;;  %v279_v4 = vadd.s32 64, %v21_v0  ;;  %40 = vperm.xlu0 %1233, %v21_v0   ;;  %1235 = vset.pattern.permute.xlu2 %v1414_v5 }
   0x4   :  { %168 = vperm.xlu1 %1234, %v151_v3   ;;  %296 = vperm.xlu2 %1235, %v279_v4  }
   0x5   :  { %10 = vsyncpa [#allocation3], 0  ;;  %v152_v7 = vadd.s32 32, %v22_v6  ;;  %v280_v8 = vadd.s32 64, %v22_v6  ;;  %v23_v9 = vld [vmem:[%s2053_s0 + $0x10] sm:$0xff]  ;;  %v408_v10 = vadd.s32 96, %v22_v6 }
   0x6   :  { %v29_v11 = vld [vmem:[%s2053_s0 + $0x40] sm:$0xff]  ;;  %v1415_v12 = vmov 3   ;;  %v24_v13 = vld [vmem:[%s2053_s0 + $0x18] sm:$0xff]  ;;  %v30_v16 = vld [vmem:[%s2053_s0 + $0x48] sm:$0xff]  ;;  %v407_v21 = vadd.s32 96, %v21_v0  ;;  %v153_v26 = vadd.s32 32, %v23_v9 }
   0x7   :  { %v282_v14 = vadd.s32 64, %v24_v13  ;;  %v159_v15 = vadd.s32 32, %v29_v11  ;;  %v1491_v17 = vld [vmem:[%s2053_s0 + $0x20] sm:$0xff]  ;;  %v287_v19 = vadd.s32 64, %v29_v11  ;;  %v288_v20 = vadd.s32 64, %v30_v16  ;;  %v32_v24 = vld [vmem:[%s2053_s0 + $0x58] sm:$0xff] }
   0x8   :  { %v283_v18 = vadd.s32 64, %v1491_v17  ;;  %v415_v22 = vadd.s32 96, %v29_v11  ;;  %v416_v23 = vadd.s32 96, %v30_v16  ;;  %v418_v25 = vadd.s32 96, %v32_v24  ;;  %v1506_v27 = vld [vmem:[%s2053_s0 + $0x60] sm:$0xff]  ;;  %v31_v33 = vld [vmem:[%s2053_s0 + $0x50] sm:$0xff] }
   0x9   :  { %v419_v28 = vadd.s32 96, %v1506_v27  ;;  %v154_v29 = vadd.s32 32, %v24_v13  ;;  %v281_v30 = vadd.s32 64, %v23_v9  ;;  %v160_v31 = vadd.s32 32, %v30_v16  ;;  %v1199_v39 = vld [vmem:[%s2054_s1 + $0x38] sm:$0xff]  ;;  %v1198_v44 = vld [vmem:[%s2054_s1 + $0x30] sm:$0xff] }
   0xa   :  { %43 = vperm.xlu0 %1233, %v22_v6   ;;  %v409_v32 = vadd.s32 96, %v23_v9  ;;  %v410_v34 = vadd.s32 96, %v24_v13  ;;  %v161_v35 = vadd.s32 32, %v31_v33  ;;  %v162_v36 = vadd.s32 32, %v32_v24  ;;  %611 = vmatpush.bf16.msra.mxu0 %v1199_v39  ;;  %v1533_v42 = vld [vmem:[%s2053_s0 + $0x38] sm:$0xff]  ;;  %v26_v46 = vld [vmem:[%s2053_s0 + $0x28] sm:$0xff] }
   0xb   :  { %v289_v37 = vadd.s32 64, %v31_v33  ;;  %v290_v40 = vadd.s32 64, %v32_v24  ;;  %v417_v41 = vadd.s32 96, %v31_v33  ;;  %1200 = vmatpush.bf16.msra.mxu2 %v1199_v39  ;;  %v158_v43 = vadd.s32 32, %v1533_v42  ;;  %v1197_v47 = vld [vmem:[%s2054_s1 + $0x28] sm:$0xff]  ;;  %v1196_v48 = vld [vmem:[%s2054_s1 + $0x20] sm:$0xff] }
   0xc   :  { %171 = vperm.xlu1 %1234, %v152_v7   ;;  %299 = vperm.xlu2 %1235, %v280_v8   ;;  %v1557_v49 = vld [vmem:[%s2053_s0 + $0x68] sm:$0xff]  ;;  %v155_v50 = vadd.s32 32, %v1491_v17  ;;  %v156_v52 = vadd.s32 32, %v26_v46  ;;  %v1195_v54 = vld [vmem:[%s2054_s1 + $0x18] sm:$0xff]  ;;  %v1194_v56 = vld [vmem:[%s2054_s1 + $0x10] sm:$0xff]  ;;  %v284_v58 = vadd.s32 64, %v26_v46  ;;  %v37_v7 = vlaneseq }
   0xd   :  { %v411_v59 = vadd.s32 96, %v1491_v17  ;;  %v1193_v62 = vld [vmem:[%s2054_s1 + $0x8] sm:$0xff]  ;;  %v1192_v63 = vld [vmem:[%s2054_s1] sm:$0xff]  ;;  %v412_v3 = vadd.s32 96, %v26_v46  ;;  %s1418_s24 = smov 8   ;;  %s1419_s25 = smov 16  }
   0xe   :  { %612 = vmatpush.bf16.msra.mxu0 %v1198_v44  ;;  %s1420_s26 = smov 88   ;;  %s1421_s27 = smov 80  }
   0xf   :  { %1201 = vmatpush.bf16.msra.mxu2 %v1198_v44  ;;  %s1422_s28 = smov 40   ;;  %s1423_s29 = smov 32  }
  0x10   :  { %s1424_s30 = smov 96   ;;  %s1425_s6 = smov 48  }
  0x11   :  { %s1426_s7 = smov 56   ;;  %s1427_s8 = smov 104  }
  0x12   :  { %46 = vperm.xlu0 %1233, %v23_v9   ;;  %613 = vmatpush.bf16.msra.mxu0 %v1197_v47  ;;  %v163_v9 = vadd.s32 32, %v1506_v27  ;;  %s1428_s9 = smov 64   ;;  %s1429_s1 = smov 72  }
  0x13   :  { %1202 = vmatpush.bf16.msra.mxu2 %v1197_v47  ;;  %s1430_s10 = smov 112   ;;  %s1431_s11 = smov 120  }
  0x14   :  { %1236 = vset.pattern.permute.xlu1 %v1415_v12  ;;  %1237 = vset.pattern.permute.xlu2 %v1412_v1  ;;  %s1432_s12 = smov [#allocation2]   ;;  %s1071_s15 = sshll.u32 %s2058_s5, 4  ;;  %s1072_s15 = int_to_ptr.hbm [resolvable:$true] %s1071_s15 }
  0x15   :  { %427 = vperm.xlu1 %1236, %v408_v10   ;;  %64 = vperm.xlu2 %1237, %v29_v11   ;;  %v164_v10 = vadd.s32 32, %v1557_v49  ;;  %s1069_s13 = sshll.u32 %s1432_s12, 4  ;;  %s1070_s13 = int_to_ptr.vmem [resolvable:$true] %s1069_s13 }
  0x16   :  { %614 = vmatpush.bf16.msra.mxu0 %v1196_v48 }
  0x17   :  { %1203 = vmatpush.bf16.msra.mxu2 %v1196_v48  ;;  %v1658_v48 = vld [vmem:[%s2053_s0 + $0x78] sm:$0xff] }
  0x1a   :  { %1248 = vset.pattern.permute.xlu0 %v1414_v5  ;;  %615 = vmatpush.bf16.msra.mxu0 %v1195_v54 }
  0x1b   :  { %305 = vperm.xlu0 %1248, %v282_v14   ;;  %1204 = vmatpush.bf16.msra.mxu2 %v1195_v54  ;;  %v1597_v14 = vand.u32 127, %v37_v7 }
  0x1d   :  { %1238 = vset.pattern.permute.xlu1 %v1412_v1  ;;  %1239 = vset.pattern.permute.xlu2 %v1413_v2 }
  0x1e   :  { %67 = vperm.xlu1 %1238, %v30_v16   ;;  %192 = vperm.xlu2 %1239, %v159_v15   ;;  %v291_v16 = vadd.s32 64, %v1506_v27 }
  0x1f   :  { %616 = vmatpush.bf16.msra.mxu0 %v1194_v56  ;;  %1205 = vmatpush.bf16.msra.mxu2 %v1194_v56 }
  0x23   :  { %308 = vperm.xlu0 %1248, %v283_v18   ;;  %617 = vmatpush.bf16.msra.mxu0 %v1193_v62  ;;  %v1416_v18 = vmov 0.0  }
  0x24   :  { %1206 = vmatpush.bf16.msra.mxu2 %v1193_v62 }
  0x26   :  { %1240 = vset.pattern.permute.xlu1 %v1414_v5  ;;  %1241 = vset.pattern.permute.xlu2 %v1414_v5 }
  0x27   :  { %320 = vperm.xlu1 %1240, %v287_v19   ;;  %323 = vperm.xlu2 %1241, %v288_v20  }
  0x28   :  { %618 = vmatpush.bf16.msra.mxu0 %v1192_v63  ;;  %1207 = vmatpush.bf16.msra.mxu2 %v1192_v63 }
  0x2b   :  { %1261 = vset.pattern.permute.xlu0 %v1415_v12 }
  0x2c   :  { %424 = vperm.xlu0 %1261, %v407_v21  }
  0x2f   :  { %1242 = vset.pattern.permute.xlu1 %v1415_v12  ;;  %1243 = vset.pattern.permute.xlu2 %v1415_v12 }
  0x30   :  { %448 = vperm.xlu1 %1242, %v415_v22   ;;  %451 = vperm.xlu2 %1243, %v416_v23  }
  0x34   :  { %457 = vperm.xlu0 %1261, %v418_v25  }
  0x38   :  { %1244 = vset.pattern.permute.xlu1 %v1412_v1  ;;  %1245 = vset.pattern.permute.xlu2 %v1413_v2 }
  0x39   :  { %49 = vperm.xlu1 %1244, %v24_v13   ;;  %174 = vperm.xlu2 %1245, %v153_v26  }
  0x3c   :  { %460 = vperm.xlu0 %1261, %v419_v28  }
  0x41   :  { %1246 = vset.pattern.permute.xlu1 %v1413_v2  ;;  %1247 = vset.pattern.permute.xlu2 %v1414_v5 }
  0x42   :  { %177 = vperm.xlu1 %1246, %v154_v29   ;;  %302 = vperm.xlu2 %1247, %v281_v30  }
  0x44   :  { %1270 = vset.pattern.permute.xlu0 %v1413_v2 }
  0x45   :  { %195 = vperm.xlu0 %1270, %v160_v31  }
  0x4a   :  { %1249 = vset.pattern.permute.xlu1 %v1415_v12  ;;  %1250 = vset.pattern.permute.xlu2 %v1415_v12 }
  0x4b   :  { %430 = vperm.xlu1 %1249, %v409_v32   ;;  %433 = vperm.xlu2 %1250, %v410_v34   ;;  %v420_v34 = vadd.s32 96, %v1557_v49 }
  0x4d   :  { %198 = vperm.xlu0 %1270, %v161_v35  }
  0x53   :  { %1251 = vset.pattern.permute.xlu1 %v1412_v1  ;;  %1252 = vset.pattern.permute.xlu2 %v1412_v1 }
  0x54   :  { %70 = vperm.xlu1 %1251, %v31_v33   ;;  %73 = vperm.xlu2 %1252, %v32_v24  }
  0x55   :  { %189 = vperm.xlu0 %1270, %v158_v43  }
  0x5c   :  { %1253 = vset.pattern.permute.xlu1 %v1413_v2  ;;  %1254 = vset.pattern.permute.xlu2 %v1414_v5 }
  0x5d   :  { %201 = vperm.xlu1 %1253, %v162_v36   ;;  %326 = vperm.xlu2 %1254, %v289_v37  }
  0x5e   :  { %v1523_v38 = vpop.permute.xlu2 %296  ;;  %1275 = vset.pattern.permute.xlu0 %v1412_v1 }
  0x5f   :  { %79 = vperm.xlu0 %1275, %v1557_v49   ;;  %vm343_vm4 = vcmp.eq.s32.totalorder %v1523_v38, %v1597_v14  ;;  %v1635_v38 = vld [vmem:[%s2053_s0 + $0x30] sm:$0xff] }
  0x60   :  { %v157_v44 = vadd.s32 32, %v1635_v38 }
  0x65   :  { %1255 = vset.pattern.permute.xlu1 %v1414_v5  ;;  %1256 = vset.pattern.permute.xlu2 %v1415_v12 }
  0x66   :  { %329 = vperm.xlu1 %1255, %v290_v40   ;;  %454 = vperm.xlu2 %1256, %v417_v41   ;;  %v1539_v45 = vpop.permute.xlu2 %299  ;;  %v1643_v41 = vld [vmem:[%s2053_s0 + $0x70] sm:$0xff] }
  0x67   :  { %vm344_vm5 = vcmp.eq.s32.totalorder %v1539_v45, %v1597_v14  ;;  %82 = vperm.xlu0 %1275, %v1643_v41  }
  0x68   :  { %v1113_v28 = vsel %vm344_vm5, 1.0, %v1416_v18 }
  0x6e   :  { %1257 = vset.pattern.permute.xlu1 %v1412_v1  ;;  %1258 = vset.pattern.permute.xlu2 %v1412_v1 }
  0x6f   :  { %52 = vperm.xlu1 %1257, %v1491_v17   ;;  %55 = vperm.xlu2 %1258, %v26_v46   ;;  %v1561_v51 = vpop.permute.xlu2 %64  ;;  %v292_v17 = vadd.s32 64, %v1557_v49  ;;  %v294_v49 = vadd.s32 64, %v1658_v48 }
  0x70   :  { %1284 = vset.pattern.permute.xlu0 %v1414_v5  ;;  %vm95_vm8 = vcmp.eq.s32.totalorder %v1561_v51, %v1597_v14 }
  0x71   :  { %341 = vperm.xlu0 %1284, %v294_v49   ;;  %v1088_v51 = vsel %vm95_vm8, 1.0, %v1416_v18 }
  0x74   :  { %v41_v53 = vpop.permute.xlu0 %40 }
  0x75   :  { %vm87_vm0 = vcmp.eq.s32.totalorder %v41_v53, %v1597_v14 }
  0x76   :  { %v169_v55 = vpop.permute.xlu1 %168  ;;  %v1080_v19 = vsel %vm87_vm0, 1.0, %v1416_v18 }
  0x77   :  { %1259 = vset.pattern.permute.xlu1 %v1413_v2  ;;  %1260 = vset.pattern.permute.xlu2 %v1413_v2  ;;  %vm215_vm1 = vcmp.eq.s32.totalorder %v169_v55, %v1597_v14 }
  0x78   :  { %180 = vperm.xlu1 %1259, %v155_v50   ;;  %183 = vperm.xlu2 %1260, %v156_v52   ;;  %v1572_v61 = vpop.permute.xlu2 %192  ;;  %v1096_v20 = vsel %vm215_vm1, 1.0, %v1416_v18  ;;  %v285_v50 = vadd.s32 64, %v1635_v38  ;;  %v286_v52 = vadd.s32 64, %v1533_v42 }
  0x79   :  { %v263_v25 = vadd.f32 %v1096_v20, %v1080_v19  ;;  %vm223_vm9 = vcmp.eq.s32.totalorder %v1572_v61, %v1597_v14  ;;  %1287 = vset.pattern.permute.xlu0 %v1415_v12 }
  0x7a   :  { %v1104_v54 = vsel %vm223_vm9, 1.0, %v1416_v18 }
  0x7c   :  { %v44_v57 = vpop.permute.xlu0 %43 }
  0x7d   :  { %vm88_vm2 = vcmp.eq.s32.totalorder %v44_v57, %v1597_v14 }
  0x7e   :  { %v172_v60 = vpop.permute.xlu1 %171  ;;  %v1081_v21 = vsel %vm88_vm2, 1.0, %v1416_v18 }
  0x7f   :  { %vm216_vm3 = vcmp.eq.s32.totalorder %v172_v60, %v1597_v14 }
  0x80   :  { %1262 = vset.pattern.permute.xlu1 %v1414_v5  ;;  %1263 = vset.pattern.permute.xlu2 %v1415_v12  ;;  %v1097_v22 = vsel %vm216_vm3, 1.0, %v1416_v18 }
  0x81   :  { %311 = vperm.xlu1 %1262, %v284_v58   ;;  %436 = vperm.xlu2 %1263, %v411_v59   ;;  %v1584_v4 = vpop.permute.xlu2 %323  ;;  %v264_v26 = vadd.f32 %v1097_v22, %v1081_v21  ;;  %v271_v59 = vadd.f32 %v1104_v54, %v1088_v51 }
  0x82   :  { %vm352_vm1 = vcmp.eq.s32.totalorder %v1584_v4, %v1597_v14 }
  0x83   :  { %v392_v31 = vadd.f32 %v1113_v28, %v264_v26  ;;  %v1121_v7 = vsel %vm352_vm1, 1.0, %v1416_v18 }
  0x84   :  { %v1582_v0 = vpop.permute.xlu0 %46 }
  0x85   :  { %vm89_vm10 = vcmp.eq.s32.totalorder %v1582_v0, %v1597_v14 }
  0x86   :  { %v1082_v56 = vsel %vm89_vm10, 1.0, %v1416_v18 }
  0x87   :  { %v428_v6 = vpop.permute.xlu1 %427 }
  0x88   :  { %vm472_vm6 = vcmp.eq.s32.totalorder %v428_v6, %v1597_v14 }
  0x89   :  { %1264 = vset.pattern.permute.xlu1 %v1415_v12  ;;  %1265 = vset.pattern.permute.xlu2 %v1412_v1  ;;  %v1129_v29 = vsel %vm472_vm6, 1.0, %v1416_v18 }
  0x8a   :  { %439 = vperm.xlu1 %1264, %v412_v3   ;;  %76 = vperm.xlu2 %1265, %v1506_v27   ;;  %v1595_v13 = vpop.permute.xlu2 %451  ;;  %v1112_v27 = vsel %vm343_vm4, 1.0, %v1416_v18  ;;  %v520_v35 = vadd.f32 %v1129_v29, %v392_v31  ;;  %v165_v31 = vadd.s32 32, %v1643_v41 }
  0x8b   :  { %v391_v32 = vadd.f32 %v1112_v27, %v263_v25  ;;  %vm480_vm6 = vcmp.eq.s32.totalorder %v1595_v13, %v1597_v14 }
  0x8d   :  { %v1589_v8 = vpop.permute.xlu0 %305 }
  0x8e   :  { %vm346_vm14 = vcmp.eq.s32.totalorder %v1589_v8, %v1597_v14 }
  0x8f   :  { %v1115_v63 = vsel %vm346_vm14, 1.0, %v1416_v18 }
  0x90   :  { %v1593_v11 = vpop.permute.xlu1 %67 }
  0x91   :  { %vm96_vm15 = vcmp.eq.s32.totalorder %v1593_v11, %v1597_v14 }
  0x92   :  { %1266 = vset.pattern.permute.xlu1 %v1413_v2  ;;  %1267 = vset.pattern.permute.xlu2 %v1413_v2  ;;  %v1089_v0 = vsel %vm96_vm15, 1.0, %v1416_v18 }
  0x93   :  { %204 = vperm.xlu1 %1266, %v163_v9   ;;  %207 = vperm.xlu2 %1267, %v164_v10   ;;  %v1615_v24 = vpop.permute.xlu2 %174 }
  0x94   :  { %vm217_vm11 = vcmp.eq.s32.totalorder %v1615_v24, %v1597_v14 }
  0x95   :  { %v1605_v15 = vpop.permute.xlu0 %308  ;;  %v1098_v57 = vsel %vm217_vm11, 1.0, %v1416_v18 }
  0x96   :  { %v265_v4 = vadd.f32 %v1098_v57, %v1082_v56 }
  0x99   :  { %v1613_v23 = vpop.permute.xlu1 %320 }
  0x9a   :  { %vm351_vm0 = vcmp.eq.s32.totalorder %v1613_v23, %v1597_v14  ;;  %v1137_v23 = vsel %vm480_vm6, 1.0, %v1416_v18 }
  0x9b   :  { %1268 = vset.pattern.permute.xlu1 %v1414_v5  ;;  %1269 = vset.pattern.permute.xlu2 %v1414_v5  ;;  %v1120_v3 = vsel %vm351_vm0, 1.0, %v1416_v18 }
  0x9c   :  { %332 = vperm.xlu1 %1268, %v291_v16   ;;  %335 = vperm.xlu2 %1269, %v292_v17   ;;  %v303_v40 = vpop.permute.xlu2 %302  ;;  %v413_v16 = vadd.s32 96, %v1635_v38  ;;  %v414_v17 = vadd.s32 96, %v1533_v42  ;;  %v399_v19 = vadd.f32 %v1120_v3, %v271_v59 }
  0x9d   :  { %vm345_vm2 = vcmp.eq.s32.totalorder %v303_v40, %v1597_v14 }
  0x9e   :  { %v425_v30 = vpop.permute.xlu0 %424  ;;  %v1114_v8 = vsel %vm345_vm2, 1.0, %v1416_v18  ;;  %vm347_vm2 = vcmp.eq.s32.totalorder %v1605_v15, %v1597_v14 }
  0x9f   :  { %vm471_vm7 = vcmp.eq.s32.totalorder %v425_v30, %v1597_v14  ;;  %v393_v13 = vadd.f32 %v1114_v8, %v265_v4 }
  0xa0   :  { %v1128_v33 = vsel %vm471_vm7, 1.0, %v1416_v18 }
  0xa1   :  { %v519_v36 = vadd.f32 %v1128_v33, %v391_v32 }
  0xa2   :  { %v1630_v37 = vpop.permute.xlu1 %448 }
  0xa3   :  { %v535_v39 = vpack.c.bf16 %v520_v35, %v519_v36  ;;  %vm479_vm3 = vcmp.eq.s32.totalorder %v1630_v37, %v1597_v14  ;;  %v166_v35 = vadd.s32 32, %v1658_v48  ;;  %v293_v36 = vadd.s32 64, %v1643_v41 }
  0xa4   :  { %1271 = vset.pattern.permute.xlu1 %v1415_v12  ;;  %1272 = vset.pattern.permute.xlu2 %v1412_v1  ;;  %v1136_v10 = vsel %vm479_vm3, 1.0, %v1416_v18 }
  0xa5   :  { %463 = vperm.xlu1 %1271, %v420_v34   ;;  %58 = vperm.xlu2 %1272, %v1635_v38   ;;  %v434_v46 = vpop.permute.xlu2 %433  ;;  %v527_v24 = vadd.f32 %v1136_v10, %v399_v19 }
  0xa6   :  { %619 = vmatmul.bf16.vlgmr.msra.gmra.mxu0 %v535_v39  ;;  %v1645_v43 = vpop.permute.xlu0 %457  ;;  %vm474_vm5 = vcmp.eq.s32.totalorder %v434_v46, %v1597_v14 }
  0xa7   :  { %v1131_v20 = vsel %vm474_vm5, 1.0, %v1416_v18 }
  0xab   :  { %v50_v45 = vpop.permute.xlu1 %49 }
  0xac   :  { %vm90_vm12 = vcmp.eq.s32.totalorder %v50_v45, %v1597_v14  ;;  %v422_v45 = vadd.s32 96, %v1658_v48 }
  0xad   :  { %1273 = vset.pattern.permute.xlu1 %v1412_v1  ;;  %1274 = vset.pattern.permute.xlu2 %v1413_v2  ;;  %v1083_v58 = vsel %vm90_vm12, 1.0, %v1416_v18 }
  0xae   :  { %61 = vperm.xlu1 %1273, %v1533_v42   ;;  %186 = vperm.xlu2 %1274, %v157_v44   ;;  %v1652_v47 = vpop.permute.xlu0 %460  ;;  %v1690_v62 = vpop.permute.xlu2 %73 }
  0xaf   :  { %vm98_vm12 = vcmp.eq.s32.totalorder %v1690_v62, %v1597_v14 }
  0xb0   :  { %v1091_v46 = vsel %vm98_vm12, 1.0, %v1416_v18 }
  0xb4   :  { %v178_v53 = vpop.permute.xlu1 %177 }
  0xb5   :  { %vm218_vm13 = vcmp.eq.s32.totalorder %v178_v53, %v1597_v14 }
  0xb6   :  { %v1099_v55 = vsel %vm218_vm13, 1.0, %v1416_v18  ;;  %1276 = vset.pattern.permute.xlu1 %v1414_v5  ;;  %1277 = vset.pattern.permute.xlu2 %v1414_v5  ;;  %vm482_vm13 = vcmp.eq.s32.totalorder %v1645_v43, %v1597_v14 }
  0xb7   :  { %314 = vperm.xlu1 %1276, %v285_v50   ;;  %317 = vperm.xlu2 %1277, %v286_v52   ;;  %v266_v60 = vadd.f32 %v1099_v55, %v1083_v58  ;;  %v196_v61 = vpop.permute.xlu0 %195  ;;  %v327_v29 = vpop.permute.xlu2 %326  ;;  %v1139_v53 = vsel %vm482_vm13, 1.0, %v1416_v18 }
  0xb8   :  { %vm224_vm4 = vcmp.eq.s32.totalorder %v196_v61, %v1597_v14  ;;  %vm353_vm10 = vcmp.eq.s32.totalorder %v327_v29, %v1597_v14 }
  0xb9   :  { %v1105_v6 = vsel %vm224_vm4, 1.0, %v1416_v18  ;;  %v394_v11 = vadd.f32 %v1115_v63, %v266_v60  ;;  %v1122_v44 = vsel %vm353_vm10, 1.0, %v1416_v18 }
  0xba   :  { %v272_v9 = vadd.f32 %v1105_v6, %v1089_v0  ;;  %v1116_v0 = vsel %vm347_vm2, 1.0, %v1416_v18  ;;  %vm684_vm2 = vcmask 261120  }
  0xbb   :  { %v522_v27 = vadd.f32 %v1131_v20, %v394_v11 }
  0xbc   :  { %v400_v21 = vadd.f32 %v1121_v7, %v272_v9 }
  0xbd   :  { %v431_v22 = vpop.permute.xlu1 %430 }
  0xbe   :  { %vm473_vm7 = vcmp.eq.s32.totalorder %v431_v22, %v1597_v14  ;;  %v528_v26 = vadd.f32 %v1137_v23, %v400_v21 }
  0xbf   :  { %v1130_v25 = vsel %vm473_vm7, 1.0, %v1416_v18  ;;  %1278 = vset.pattern.permute.xlu1 %v1415_v12  ;;  %1279 = vset.pattern.permute.xlu2 %v1415_v12  ;;  %v199_v33 = vpop.permute.xlu0 %198 }
  0xc0   :  { %v521_v42 = vadd.f32 %v1130_v25, %v393_v13  ;;  %442 = vperm.xlu1 %1278, %v413_v16   ;;  %445 = vperm.xlu2 %1279, %v414_v17   ;;  %v539_v28 = vpack.c.bf16 %v528_v26, %v527_v24  ;;  %v455_v34 = vpop.permute.xlu2 %454  ;;  %vm225_vm8 = vcmp.eq.s32.totalorder %v199_v33, %v1597_v14  ;;  %v679_v13 = vld [vmem:[%s2056_s3 + $0x18] sm:$0xff]  ;;  %v678_v24 = vld [vmem:[%s2056_s3 + $0x10] sm:$0xff]  ;;  %v677_v25 = vld [vmem:[%s2056_s3 + $0x8] sm:$0xff] }
  0xc1   :  { %vm481_vm14 = vcmp.eq.s32.totalorder %v455_v34, %v1597_v14  ;;  %745 = vmatpush.msra.mxu1 %v679_v13  ;;  %1208 = vmatpush.msra.mxu3 %v679_v13 }
  0xc2   :  { %v536_v30 = vpack.c.bf16 %v522_v27, %v521_v42  ;;  %639 = vmatmul.bf16.vlgmr.msra.gmra.mxu2 %v539_v28  ;;  %v1138_v51 = vsel %vm481_vm14, 1.0, %v1416_v18  ;;  %v676_v42 = vld [vmem:[%s2056_s3] sm:$0xff]  ;;  %vm483_vm14 = vcmp.eq.s32.totalorder %v1652_v47, %v1597_v14 }
  0xc3   :  { %746 = vmatpush.msra.mxu1 %v678_v24  ;;  %1209 = vmatpush.msra.mxu3 %v678_v24 }
  0xc4   :  { %624 = vmatmul.bf16.gmra.mxu0 %v536_v30 }
  0xc5   :  { %747 = vmatpush.msra.mxu1 %v677_v25  ;;  %1210 = vmatpush.msra.mxu3 %v677_v25 }
  0xc6   :  { %v71_v32 = vpop.permute.xlu1 %70 }
  0xc7   :  { %vm97_vm9 = vcmp.eq.s32.totalorder %v71_v32, %v1597_v14  ;;  %v1767_v20 = vpop.permute.xlu0 %189  ;;  %748 = vmatpush.msra.mxu1 %v676_v42  ;;  %1211 = vmatpush.msra.mxu3 %v676_v42 }
  0xc8   :  { %1280 = vset.pattern.permute.xlu1 %v1412_v1  ;;  %1281 = vset.pattern.permute.xlu2 %v1413_v2  ;;  %v1106_v1 = vsel %vm225_vm8, 1.0, %v1416_v18  ;;  %v1090_v38 = vsel %vm97_vm9, 1.0, %v1416_v18 }
  0xc9   :  { %85 = vperm.xlu1 %1280, %v1658_v48   ;;  %210 = vperm.xlu2 %1281, %v165_v31   ;;  %v56_v39 = vpop.permute.xlu2 %55  ;;  %v273_v40 = vadd.f32 %v1106_v1, %v1090_v38 }
  0xca   :  { %vm92_vm3 = vcmp.eq.s32.totalorder %v56_v39, %v1597_v14 }
  0xcb   :  { %v401_v50 = vadd.f32 %v1122_v44, %v273_v40  ;;  %v1085_v3 = vsel %vm92_vm3, 1.0, %v1416_v18  ;;  %v1140_v40 = vsel %vm483_vm14, 1.0, %v1416_v18 }
  0xcd   :  { %v529_v43 = vadd.f32 %v1138_v51, %v401_v50 }
  0xcf   :  { %v202_v37 = vpop.permute.xlu1 %201 }
  0xd0   :  { %vm226_vm11 = vcmp.eq.s32.totalorder %v202_v37, %v1597_v14 }
  0xd1   :  { %1282 = vset.pattern.permute.xlu1 %v1413_v2  ;;  %1283 = vset.pattern.permute.xlu2 %v1414_v5  ;;  %v1107_v2 = vsel %vm226_vm11, 1.0, %v1416_v18  ;;  %v421_v5 = vadd.s32 96, %v1643_v41  ;;  %v80_v26 = vpop.permute.xlu0 %79 }
  0xd2   :  { %213 = vperm.xlu1 %1282, %v166_v35   ;;  %338 = vperm.xlu2 %1283, %v293_v36   ;;  %v274_v52 = vadd.f32 %v1107_v2, %v1091_v46  ;;  %v184_v55 = vpop.permute.xlu2 %183  ;;  %vm100_vm9 = vcmp.eq.s32.totalorder %v80_v26, %v1597_v14 }
  0xd3   :  { %vm220_vm4 = vcmp.eq.s32.totalorder %v184_v55, %v1597_v14  ;;  %v1093_v30 = vsel %vm100_vm9, 1.0, %v1416_v18 }
  0xd4   :  { %v1101_v4 = vsel %vm220_vm4, 1.0, %v1416_v18 }
  0xd5   :  { %v268_v7 = vadd.f32 %v1101_v4, %v1085_v3 }
  0xd8   :  { %v330_v49 = vpop.permute.xlu1 %329 }
  0xd9   :  { %vm354_vm15 = vcmp.eq.s32.totalorder %v330_v49, %v1597_v14  ;;  %v1801_v49 = vld [vmem:[%s2055_s2] ss:$0 sm:$0xff] }
  0xda   :  { %v1123_v54 = vsel %vm354_vm15, 1.0, %v1416_v18  ;;  %1285 = vset.pattern.permute.xlu1 %v1415_v12  ;;  %1286 = vset.pattern.permute.xlu2 %v1415_v12 }
  0xdb   :  { %v402_v41 = vadd.f32 %v1123_v54, %v274_v52  ;;  %466 = vperm.xlu1 %1285, %v421_v5   ;;  %469 = vperm.xlu2 %1286, %v422_v45   ;;  %v437_v58 = vpop.permute.xlu2 %436 }
  0xdc   :  { %vm475_vm6 = vcmp.eq.s32.totalorder %v437_v58, %v1597_v14 }
  0xdd   :  { %v530_v48 = vadd.f32 %v1139_v53, %v402_v41  ;;  %v1132_v9 = vsel %vm475_vm6, 1.0, %v1416_v18 }
  0xdf   :  { %v540_v56 = vpack.c.bf16 %v530_v48, %v529_v43 }
  0xe1   :  { %644 = vmatmul.bf16.gmra.mxu2 %v540_v56  ;;  %v53_v57 = vpop.permute.xlu1 %52 }
  0xe2   :  { %vm91_vm1 = vcmp.eq.s32.totalorder %v53_v57, %v1597_v14 }
  0xe3   :  { %v1084_v12 = vsel %vm91_vm1, 1.0, %v1416_v18  ;;  %vm222_vm1 = vcmp.eq.s32.totalorder %v1767_v20, %v1597_v14 }
  0xe4   :  { %v77_v60 = vpop.permute.xlu2 %76  ;;  %v1103_v43 = vsel %vm222_vm1, 1.0, %v1416_v18  ;;  %vm798_vm1 = vcmask 64512  }
  0xe5   :  { %vm99_vm11 = vcmp.eq.s32.totalorder %v77_v60, %v1597_v14 }
  0xe6   :  { %v1092_v32 = vsel %vm99_vm11, 1.0, %v1416_v18 }
  0xea   :  { %v181_v59 = vpop.permute.xlu1 %180 }
  0xeb   :  { %vm219_vm0 = vcmp.eq.s32.totalorder %v181_v59, %v1597_v14 }
  0xec   :  { %v1100_v62 = vsel %vm219_vm0, 1.0, %v1416_v18 }
  0xed   :  { %v267_v63 = vadd.f32 %v1100_v62, %v1084_v12  ;;  %v208_v15 = vpop.permute.xlu2 %207 }
  0xee   :  { %vm228_vm8 = vcmp.eq.s32.totalorder %v208_v15, %v1597_v14 }
  0xef   :  { %v395_v8 = vadd.f32 %v1116_v0, %v267_v63  ;;  %v1109_v29 = vsel %vm228_vm8, 1.0, %v1416_v18 }
  0xf0   :  { %v276_v34 = vadd.f32 %v1109_v29, %v1093_v30 }
  0xf1   :  { %v523_v17 = vadd.f32 %v1132_v9, %v395_v8  ;;  %v83_v9 = vpop.permute.xlu0 %82 }
  0xf3   :  { %v312_v61 = vpop.permute.xlu1 %311 }
  0xf4   :  { %vm348_vm5 = vcmp.eq.s32.totalorder %v312_v61, %v1597_v14 }
  0xf5   :  { %v1117_v6 = vsel %vm348_vm5, 1.0, %v1416_v18 }
  0xf6   :  { %v396_v11 = vadd.f32 %v1117_v6, %v268_v7  ;;  %v336_v22 = vpop.permute.xlu2 %335 }
  0xf7   :  { %vm356_vm13 = vcmp.eq.s32.totalorder %v336_v22, %v1597_v14 }
  0xf8   :  { %v1125_v36 = vsel %vm356_vm13, 1.0, %v1416_v18 }
  0xf9   :  { %v404_v39 = vadd.f32 %v1125_v36, %v276_v34 }
  0xfc   :  { %v440_v10 = vpop.permute.xlu1 %439 }
  0xfd   :  { %vm476_vm7 = vcmp.eq.s32.totalorder %v440_v10, %v1597_v14 }
  0xfe   :  { %v1133_v16 = vsel %vm476_vm7, 1.0, %v1416_v18 }
  0xff   :  { %v524_v19 = vadd.f32 %v1133_v16, %v396_v11  ;;  %v59_v27 = vpop.permute.xlu2 %58 }
 0x100   :  { %vm93_vm3 = vcmp.eq.s32.totalorder %v59_v27, %v1597_v14 }
 0x101   :  { %v537_v21 = vpack.c.bf16 %v524_v19, %v523_v17  ;;  %v1086_v57 = vsel %vm93_vm3, 1.0, %v1416_v18  ;;  %v342_v19 = vpop.permute.xlu0 %341  ;;  %vm1036_vm3 = vcmask 130048  }
 0x102   :  { %vm358_vm13 = vcmp.eq.s32.totalorder %v342_v19, %v1597_v14 }
 0x103   :  { %629 = vmatmul.bf16.gmra.mxu0 %v537_v21  ;;  %v1127_v26 = vsel %vm358_vm13, 1.0, %v1416_v18  ;;  %vm1057_vm13 = vcmask 850944  }
 0x105   :  { %v205_v23 = vpop.permute.xlu1 %204 }
 0x106   :  { %vm227_vm10 = vcmp.eq.s32.totalorder %v205_v23, %v1597_v14 }
 0x107   :  { %v1108_v31 = vsel %vm227_vm10, 1.0, %v1416_v18  ;;  %vm101_vm10 = vcmp.eq.s32.totalorder %v83_v9, %v1597_v14 }
 0x108   :  { %v275_v35 = vadd.f32 %v1108_v31, %v1092_v32  ;;  %v187_v38 = vpop.permute.xlu2 %186  ;;  %v1094_v23 = vsel %vm101_vm10, 1.0, %v1416_v18  ;;  %vm1051_vm10 = vcmask 654336  }
 0x109   :  { %vm221_vm4 = vcmp.eq.s32.totalorder %v187_v38, %v1597_v14 }
 0x10a   :  { %v1102_v58 = vsel %vm221_vm4, 1.0, %v1416_v18  ;;  %vm1038_vm4 = vcmask 195584  }
 0x10b   :  { %v269_v61 = vadd.f32 %v1102_v58, %v1086_v57 }
 0x10e   :  { %v333_v28 = vpop.permute.xlu1 %332 }
 0x10f   :  { %vm355_vm12 = vcmp.eq.s32.totalorder %v333_v28, %v1597_v14 }
 0x110   :  { %v1124_v33 = vsel %vm355_vm12, 1.0, %v1416_v18 }
 0x111   :  { %v403_v37 = vadd.f32 %v1124_v33, %v275_v35  ;;  %v318_v47 = vpop.permute.xlu2 %317 }
 0x112   :  { %vm350_vm5 = vcmp.eq.s32.totalorder %v318_v47, %v1597_v14 }
 0x113   :  { %v531_v5 = vadd.f32 %v1140_v40, %v403_v37  ;;  %v1119_v59 = vsel %vm350_vm5, 1.0, %v1416_v18  ;;  %vm1041_vm5 = vcmask 326656  }
 0x117   :  { %v464_v1 = vpop.permute.xlu1 %463 }
 0x118   :  { %vm484_vm15 = vcmp.eq.s32.totalorder %v464_v1, %v1597_v14 }
 0x119   :  { %v1141_v44 = vsel %vm484_vm15, 1.0, %v1416_v18 }
 0x11a   :  { %v532_v2 = vadd.f32 %v1141_v44, %v404_v39  ;;  %v446_v48 = vpop.permute.xlu2 %445 }
 0x11b   :  { %vm478_vm7 = vcmp.eq.s32.totalorder %v446_v48, %v1597_v14 }
 0x11c   :  { %v541_v45 = vpack.c.bf16 %v532_v2, %v531_v5  ;;  %v1135_v12 = vsel %vm478_vm7, 1.0, %v1416_v18  ;;  %vm1045_vm7 = vcmask 457728  }
 0x11e   :  { %649 = vmatmul.bf16.gmra.mxu2 %v541_v45 }
 0x120   :  { %v62_v46 = vpop.permute.xlu1 %61 }
 0x121   :  { %vm94_vm0 = vcmp.eq.s32.totalorder %v62_v46, %v1597_v14 }
 0x122   :  { %v1087_v51 = vsel %vm94_vm0, 1.0, %v1416_v18 }
 0x123   :  { %v620_v50 = vpop.f32.mrf.mxu0  ;;  %v270_v56 = vadd.f32 %v1103_v43, %v1087_v51  ;;  %v211_v7 = vpop.permute.xlu2 %210  ;;  %v1856_v43 = vld [vmem:[%s2057_s4] ss:$0 sm:$0xff]  ;;  %s1417_s4 = smov 24  }
 0x124   :  { %v621_v52 = vadd.f32 %v1801_v49, %v620_v50  ;;  %vm229_vm9 = vcmp.eq.s32.totalorder %v211_v7, %v1597_v14 }
 0x125   :  { %v398_v62 = vadd.f32 %v1119_v59, %v270_v56  ;;  %v1110_v22 = vsel %vm229_vm9, 1.0, %v1416_v18  ;;  %vm1049_vm9 = vcmask 588800  }
 0x126   :  { %1290 = vtanh.f32 %v621_v52  ;;  %v277_v28 = vadd.f32 %v1110_v22, %v1094_v23 }
 0x127   :  { %v526_v6 = vadd.f32 %v1135_v12, %v398_v62 }
 0x129   :  { %v315_v53 = vpop.permute.xlu1 %314 }
 0x12a   :  { %vm349_vm6 = vcmp.eq.s32.totalorder %v315_v53, %v1597_v14 }
 0x12b   :  { %v622_v54 = vpop.f32.mrf.mxu0  ;;  %v1118_v60 = vsel %vm349_vm6, 1.0, %v1416_v18  ;;  %vm1043_vm6 = vcmask 392192  }
 0x12c   :  { %v1291_v41 = vpop.eup %1290  ;;  %v623_v55 = vadd.f32 %v1801_v49, %v622_v54  ;;  %v397_v0 = vadd.f32 %v1118_v60, %v269_v61  ;;  %v339_v11 = vpop.permute.xlu2 %338 }
 0x12d   :  { %1176 = vmatmul.msk.f32.vlgmr.msra.gmra.mxu1 %vm684_vm2, %v1291_v41  ;;  %vm357_vm14 = vcmp.eq.s32.totalorder %v339_v11, %v1597_v14 }
 0x12e   :  { %1292 = vtanh.f32 %v623_v55  ;;  %v1126_v30 = vsel %vm357_vm14, 1.0, %v1416_v18  ;;  %vm1061_vm14 = vcmask 982016  }
 0x12f   :  { %v405_v34 = vadd.f32 %v1126_v30, %v277_v28 }
 0x132   :  { %v443_v63 = vpop.permute.xlu1 %442 }
 0x133   :  { %vm477_vm8 = vcmp.eq.s32.totalorder %v443_v63, %v1597_v14 }
 0x134   :  { %v1293_v3 = vpop.eup %1292  ;;  %v1134_v4 = vsel %vm477_vm8, 1.0, %v1416_v18  ;;  %vm1047_vm8 = vcmask 523264  }
 0x135   :  { %v525_v15 = vadd.f32 %v1134_v4, %v397_v0  ;;  %1177 = vmatmul.msk.f32.gmra.mxu1 %vm684_vm2, %v1293_v3  ;;  %v470_v24 = vpop.permute.xlu2 %469 }
 0x136   :  { %vm486_vm15 = vcmp.eq.s32.totalorder %v470_v24, %v1597_v14 }
 0x137   :  { %v538_v8 = vpack.c.bf16 %v526_v6, %v525_v15  ;;  %v1143_v32 = vsel %vm486_vm15, 1.0, %v1416_v18 }
 0x139   :  { %634 = vmatmul.bf16.gmra.mxu0 %v538_v8 }
 0x13b   :  { %v86_v10 = vpop.permute.xlu1 %85 }
 0x13c   :  { %vm102_vm11 = vcmp.eq.s32.totalorder %v86_v10, %v1597_v14 }
 0x13d   :  { %v1095_v13 = vsel %vm102_vm11, 1.0, %v1416_v18  ;;  %vm1053_vm11 = vcmask 719872  }
 0x141   :  { %v625_v16 = vpop.f32.mrf.mxu0 }
 0x142   :  { %v626_v17 = vadd.f32 %v1801_v49, %v625_v16 }
 0x144   :  { %1294 = vtanh.f32 %v626_v17  ;;  %v214_v20 = vpop.permute.xlu1 %213 }
 0x145   :  { %vm230_vm12 = vcmp.eq.s32.totalorder %v214_v20, %v1597_v14  ;;  %v640_v38 = vpop.f32.mrf.mxu2 }
 0x146   :  { %v1111_v21 = vsel %vm230_vm12, 1.0, %v1416_v18  ;;  %v641_v15 = vadd.f32 %v1801_v49, %v640_v38  ;;  %vm1055_vm12 = vcmask 785408  }
 0x147   :  { %v278_v25 = vadd.f32 %v1111_v21, %v1095_v13 }
 0x149   :  { %v627_v42 = vpop.f32.mrf.mxu0  ;;  %v406_v31 = vadd.f32 %v1127_v26, %v278_v25 }
 0x14a   :  { %v1295_v27 = vpop.eup %1294  ;;  %v628_v29 = vadd.f32 %v1801_v49, %v627_v42 }
 0x14b   :  { %1178 = vmatmul.msk.f32.gmra.mxu1 %vm684_vm2, %v1295_v27  ;;  %v534_v36 = vadd.f32 %v1143_v32, %v406_v31 }
 0x14c   :  { %1296 = vtanh.f32 %v628_v29 }
 0x14d   :  { %v467_v33 = vpop.permute.xlu1 %466  ;;  %v642_v40 = vpop.f32.mrf.mxu2 }
 0x14e   :  { %vm485_vm0 = vcmp.eq.s32.totalorder %v467_v33, %v1597_v14  ;;  %v643_v11 = vadd.f32 %v1801_v49, %v642_v40 }
 0x14f   :  { %v1142_v35 = vsel %vm485_vm0, 1.0, %v1416_v18 }
 0x150   :  { %v533_v37 = vadd.f32 %v1142_v35, %v405_v34 }
 0x152   :  { %v1297_v1 = vpop.eup %1296  ;;  %v542_v39 = vpack.c.bf16 %v534_v36, %v533_v37 }
 0x153   :  { %1179 = vmatmul.msk.f32.gmra.mxu1 %vm684_vm2, %v1297_v1 }
 0x154   :  { %654 = vmatmul.bf16.gmra.mxu2 %v542_v39 }
 0x164   :  { %v645_v44 = vpop.f32.mrf.mxu2 }
 0x165   :  { %v646_v2 = vadd.f32 %v1801_v49, %v645_v44 }
 0x167   :  { %1298 = vtanh.f32 %v646_v2 }
 0x16c   :  { %v647_v5 = vpop.f32.mrf.mxu2 }
 0x16d   :  { %v1299_v45 = vpop.eup %1298  ;;  %v648_v46 = vadd.f32 %v1801_v49, %v647_v5 }
 0x16e   :  { %1186 = vmatmul.msk.f32.vlgmr.msra.gmra.mxu3 %vm684_vm2, %v1299_v45 }
 0x16f   :  { %1300 = vtanh.f32 %v648_v46 }
 0x175   :  { %v1301_v14 = vpop.eup %1300 }
 0x176   :  { %1187 = vmatmul.msk.f32.gmra.mxu3 %vm684_vm2, %v1301_v14 }
 0x180   :  { %v630_v18 = vpop.f32.mrf.mxu0 }
 0x181   :  { %v631_v47 = vadd.f32 %v1801_v49, %v630_v18 }
 0x183   :  { %1302 = vtanh.f32 %v631_v47 }
 0x188   :  { %v632_v50 = vpop.f32.mrf.mxu0 }
 0x189   :  { %v1303_v52 = vpop.eup %1302  ;;  %v633_v53 = vadd.f32 %v1801_v49, %v632_v50 }
 0x18a   :  { %1180 = vmatmul.msk.f32.gmra.mxu1 %vm684_vm2, %v1303_v52 }
 0x18b   :  { %1304 = vtanh.f32 %v633_v53 }
 0x191   :  { %v1305_v51 = vpop.eup %1304 }
 0x192   :  { %1181 = vmatmul.msk.f32.gmra.mxu1 %vm684_vm2, %v1305_v51 }
 0x1a1   :  { %v650_v54 = vpop.f32.mrf.mxu2 }
 0x1a2   :  { %v651_v41 = vadd.f32 %v1801_v49, %v650_v54 }
 0x1a4   :  { %1306 = vtanh.f32 %v651_v41 }
 0x1a9   :  { %v652_v48 = vpop.f32.mrf.mxu2 }
 0x1aa   :  { %v1307_v55 = vpop.eup %1306  ;;  %v653_v56 = vadd.f32 %v1801_v49, %v652_v48  ;;  %v750_v57 = vpop.f32.mrf.mxu1 }
 0x1ab   :  { %v1860_v58 = vadd.f32 %v1856_v43, %v750_v57  ;;  %1188 = vmatmul.msk.f32.gmra.mxu3 %vm684_vm2, %v1307_v55 }
 0x1ac   :  { %1308 = vtanh.f32 %v653_v56 }
 0x1ad   :  { %v799_v59 = vsel %vm798_vm1, %v1860_v58, -inf }
 0x1ae   :  { %800 = vmax.xlane.f32.xlu0 %v799_v59 }
 0x1b2   :  { %v1309_v60 = vpop.eup %1308  ;;  %v753_v61 = vpop.f32.mrf.mxu1 }
 0x1b3   :  { %v1866_v62 = vadd.f32 %v1856_v43, %v753_v61  ;;  %1189 = vmatmul.msk.f32.gmra.mxu3 %vm684_vm2, %v1309_v60 }
 0x1b5   :  { %v802_v12 = vsel %vm798_vm1, %v1866_v62, -inf }
 0x1b6   :  { %803 = vmax.xlane.f32.xlu1 %v802_v12  ;;  %v635_v63 = vpop.f32.mrf.mxu0 }
 0x1b7   :  { %v636_v0 = vadd.f32 %v1801_v49, %v635_v63 }
 0x1b9   :  { %1310 = vtanh.f32 %v636_v0 }
 0x1be   :  { %v637_v3 = vpop.f32.mrf.mxu0 }
 0x1bf   :  { %v1311_v4 = vpop.eup %1310  ;;  %v638_v6 = vadd.f32 %v1801_v49, %v637_v3 }
 0x1c0   :  { %1182 = vmatmul.msk.f32.gmra.mxu1 %vm684_vm2, %v1311_v4 }
 0x1c1   :  { %1312 = vtanh.f32 %v638_v6 }
 0x1c2   :  { %1314 = vtanh.f32 %v641_v15 }
 0x1c3   :  { %1316 = vtanh.f32 %v643_v11 }
 0x1c7   :  { %v1313_v7 = vpop.eup %1312 }
 0x1c8   :  { %v756_v8 = vpop.f32.mrf.mxu1  ;;  %1183 = vmatmul.msk.f32.gmra.mxu1 %vm684_vm2, %v1313_v7  ;;  %v1315_v16 = vpop.eup %1314 }
 0x1c9   :  { %v1877_v9 = vadd.f32 %v1856_v43, %v756_v8  ;;  %v1317_v21 = vpop.eup %1316 }
 0x1cb   :  { %v805_v10 = vsel %vm798_vm1, %v1877_v9, -inf }
 0x1cc   :  { %806 = vmax.xlane.f32.xlu2 %v805_v10 }
 0x1d0   :  { %v759_v17 = vpop.f32.mrf.mxu1  ;;  %1184 = vmatmul.msk.f32.gmra.mxu1 %vm684_vm2, %v1315_v16 }
 0x1d1   :  { %v760_v19 = vadd.f32 %v1856_v43, %v759_v17 }
 0x1d3   :  { %v808_v20 = vsel %vm798_vm1, %v760_v19, -inf }
 0x1d4   :  { %809 = vmax.xlane.f32.xlu0 %v808_v20 }
 0x1d7   :  { %v655_v22 = vpop.f32.mrf.mxu2 }
 0x1d8   :  { %v656_v23 = vadd.f32 %v1801_v49, %v655_v22  ;;  %1185 = vmatmul.msk.f32.gmra.mxu1 %vm684_vm2, %v1317_v21 }
 0x1da   :  { %1318 = vtanh.f32 %v656_v23 }
 0x1df   :  { %v657_v13 = vpop.f32.mrf.mxu2 }
 0x1e0   :  { %v1319_v24 = vpop.eup %1318  ;;  %v658_v25 = vadd.f32 %v1801_v49, %v657_v13 }
 0x1e1   :  { %1190 = vmatmul.msk.f32.gmra.mxu3 %vm684_vm2, %v1319_v24 }
 0x1e2   :  { %1320 = vtanh.f32 %v658_v25 }
 0x1e8   :  { %v1321_v26 = vpop.eup %1320 }
 0x1e9   :  { %1191 = vmatmul.msk.f32.gmra.mxu3 %vm684_vm2, %v1321_v26 }
 0x1f1   :  { %v780_v42 = vpop.f32.mrf.mxu3 }
 0x1f2   :  { %v1891_v27 = vadd.f32 %v1856_v43, %v780_v42 }
 0x1f4   :  { %v829_v28 = vsel %vm798_vm1, %v1891_v27, -inf }
 0x1f5   :  { %830 = vmax.xlane.f32.xlu0 %v829_v28 }
 0x1f9   :  { %v783_v29 = vpop.f32.mrf.mxu3 }
 0x1fa   :  { %v1896_v30 = vadd.f32 %v1856_v43, %v783_v29 }
 0x1fc   :  { %v832_v49 = vsel %vm798_vm1, %v1896_v30, -inf }
 0x1fd   :  { %833 = vmax.xlane.f32.xlu1 %v832_v49 }
 0x207   :  { %v762_v31 = vpop.f32.mrf.mxu1 }
 0x208   :  { %v1901_v32 = vadd.f32 %v1856_v43, %v762_v31 }
 0x20a   :  { %v811_v33 = vsel %vm798_vm1, %v1901_v32, -inf }
 0x20b   :  { %812 = vmax.xlane.f32.xlu2 %v811_v33 }
 0x20f   :  { %v765_v34 = vpop.f32.mrf.mxu1 }
 0x210   :  { %v1906_v35 = vadd.f32 %v1856_v43, %v765_v34 }
 0x212   :  { %v814_v36 = vsel %vm798_vm1, %v1906_v35, -inf }
 0x213   :  { %815 = vmax.xlane.f32.xlu1 %v814_v36 }
 0x221   :  { %v801_v45 = vpop.xlane.xlu0 %800 }
 0x222   :  { %v847_v55 = vsub.f32 %v1860_v58, %v801_v45 }
 0x224   :  { %v863_v59 = vmul.f32 1.442695, %v847_v55 }
 0x229   :  { %v804_v60 = vpop.xlane.xlu1 %803 }
 0x22a   :  { %v848_v0 = vsub.f32 %v1866_v62, %v804_v60 }
 0x22c   :  { %v865_v7 = vmul.f32 1.442695, %v848_v0 }
 0x22e   :  { %v786_v37 = vpop.f32.mrf.mxu3 }
 0x22f   :  { %v1911_v1 = vadd.f32 %v1856_v43, %v786_v37 }
 0x231   :  { %v835_v38 = vsel %vm798_vm1, %v1911_v1, -inf }
 0x232   :  { %836 = vmax.xlane.f32.xlu2 %v835_v38 }
 0x236   :  { %v789_v39 = vpop.f32.mrf.mxu3 }
 0x237   :  { %v1916_v40 = vadd.f32 %v1856_v43, %v789_v39 }
 0x239   :  { %v838_v44 = vsel %vm798_vm1, %v1916_v40, -inf }
 0x23a   :  { %839 = vmax.xlane.f32.xlu0 %v838_v44 }
 0x23d   :  { %v768_v2 = vpop.f32.mrf.mxu1 }
 0x23e   :  { %v1921_v5 = vadd.f32 %v1856_v43, %v768_v2 }
 0x23f   :  { %v807_v61 = vpop.xlane.xlu2 %806 }
 0x240   :  { %v817_v46 = vsel %vm798_vm1, %v1921_v5, -inf  ;;  %v849_v58 = vsub.f32 %v1877_v9, %v807_v61 }
 0x241   :  { %818 = vmax.xlane.f32.xlu2 %v817_v46 }
 0x242   :  { %v867_v8 = vmul.f32 1.442695, %v849_v58 }
 0x245   :  { %v771_v14 = vpop.f32.mrf.mxu1 }
 0x246   :  { %v1926_v18 = vadd.f32 %v1856_v43, %v771_v14 }
 0x247   :  { %v810_v47 = vpop.xlane.xlu0 %809 }
 0x248   :  { %v850_v50 = vsub.f32 %v760_v19, %v810_v47  ;;  %v820_v52 = vsel %vm798_vm1, %v1926_v18, -inf }
 0x249   :  { %821 = vmax.xlane.f32.xlu0 %v820_v52 }
 0x24a   :  { %v869_v53 = vmul.f32 1.442695, %v850_v50 }
 0x24c   :  { %1322 = vpow2.f32 %v869_v53 }
 0x24d   :  { %v774_v56 = vpop.f32.mrf.mxu1  ;;  %1324 = vpow2.f32 %v863_v59 }
 0x24e   :  { %v1941_v12 = vadd.f32 %v1856_v43, %v774_v56  ;;  %1326 = vpow2.f32 %v865_v7 }
 0x24f   :  { %1328 = vpow2.f32 %v867_v8 }
 0x250   :  { %v823_v6 = vsel %vm798_vm1, %v1941_v12, -inf }
 0x252   :  { %v1930_v51 = vpop.eup %1322 }
 0x253   :  { %v904_v54 = vsel %vm798_vm1, %v1930_v51, 0.0  ;;  %v1955_v16 = vpop.eup %1324 }
 0x254   :  { %905 = vadd.xlane.f32.xlu0 %v904_v54  ;;  %v895_v20 = vsel %vm798_vm1, %v1955_v16, 0.0  ;;  %v1963_v22 = vpop.eup %1326 }
 0x255   :  { %v777_v15 = vpop.f32.mrf.mxu1  ;;  %v1965_v23 = vpop.eup %1328  ;;  %v898_v26 = vsel %vm798_vm1, %v1963_v22, 0.0 }
 0x256   :  { %v1953_v62 = vadd.f32 %v1856_v43, %v777_v15  ;;  %v901_v25 = vsel %vm798_vm1, %v1965_v23, 0.0 }
 0x258   :  { %v826_v19 = vsel %vm798_vm1, %v1953_v62, -inf }
 0x264   :  { %v792_v41 = vpop.f32.mrf.mxu3 }
 0x265   :  { %v1935_v48 = vadd.f32 %v1856_v43, %v792_v41 }
 0x267   :  { %v841_v57 = vsel %vm798_vm1, %v1935_v48, -inf }
 0x268   :  { %842 = vmax.xlane.f32.xlu1 %v841_v57  ;;  %v831_v10 = vpop.xlane.xlu0 %830 }
 0x269   :  { %v857_v9 = vsub.f32 %v1891_v27, %v831_v10 }
 0x26b   :  { %v883_v21 = vmul.f32 1.442695, %v857_v9 }
 0x26c   :  { %v795_v63 = vpop.f32.mrf.mxu3 }
 0x26d   :  { %v1945_v3 = vadd.f32 %v1856_v43, %v795_v63  ;;  %1330 = vpow2.f32 %v883_v21 }
 0x26f   :  { %v844_v4 = vsel %vm798_vm1, %v1945_v3, -inf }
 0x270   :  { %845 = vmax.xlane.f32.xlu2 %v844_v4  ;;  %824 = vmax.xlane.f32.xlu1 %v823_v6  ;;  %v834_v11 = vpop.xlane.xlu1 %833 }
 0x271   :  { %v858_v17 = vsub.f32 %v1896_v30, %v834_v11 }
 0x273   :  { %v885_v43 = vmul.f32 1.442695, %v858_v17  ;;  %v1972_v27 = vpop.eup %1330 }
 0x274   :  { %v925_v49 = vsel %vm798_vm1, %v1972_v27, 0.0 }
 0x275   :  { %1332 = vpow2.f32 %v885_v43 }
 0x278   :  { %827 = vmax.xlane.f32.xlu2 %v826_v19  ;;  %896 = vadd.xlane.f32.xlu1 %v895_v20 }
 0x27b   :  { %v1974_v28 = vpop.eup %1332 }
 0x27c   :  { %v928_v31 = vsel %vm798_vm1, %v1974_v28, 0.0 }
 0x27e   :  { %v813_v13 = vpop.xlane.xlu2 %812 }
 0x27f   :  { %v851_v24 = vsub.f32 %v1901_v32, %v813_v13 }
 0x280   :  { %902 = vadd.xlane.f32.xlu2 %v901_v25  ;;  %899 = vadd.xlane.f32.xlu1 %v898_v26 }
 0x281   :  { %v871_v42 = vmul.f32 1.442695, %v851_v24 }
 0x283   :  { %1334 = vpow2.f32 %v871_v42 }
 0x286   :  { %v816_v29 = vpop.xlane.xlu1 %815 }
 0x287   :  { %v852_v30 = vsub.f32 %v1906_v35, %v816_v29 }
 0x288   :  { %926 = vadd.xlane.f32.xlu1 %v925_v49  ;;  %929 = vadd.xlane.f32.xlu2 %v928_v31 }
 0x289   :  { %v873_v32 = vmul.f32 1.442695, %v852_v30  ;;  %v1981_v33 = vpop.eup %1334 }
 0x28a   :  { %v907_v34 = vsel %vm798_vm1, %v1981_v33, 0.0 }
 0x28b   :  { %1336 = vpow2.f32 %v873_v32 }
 0x290   :  { %908 = vadd.xlane.f32.xlu1 %v907_v34 }
 0x291   :  { %v1985_v36 = vpop.eup %1336 }
 0x292   :  { %v910_v35 = vsel %vm798_vm1, %v1985_v36, 0.0 }
 0x293   :  { %911 = vadd.xlane.f32.xlu2 %v910_v35 }
 0x2a5   :  { %v837_v37 = vpop.xlane.xlu2 %836 }
 0x2a6   :  { %v859_v38 = vsub.f32 %v1911_v1, %v837_v37 }
 0x2a8   :  { %v887_v39 = vmul.f32 1.442695, %v859_v38 }
 0x2aa   :  { %1338 = vpow2.f32 %v887_v39 }
 0x2ad   :  { %v840_v44 = vpop.xlane.xlu0 %839 }
 0x2ae   :  { %v860_v2 = vsub.f32 %v1916_v40, %v840_v44 }
 0x2b0   :  { %v1991_v45 = vpop.eup %1338  ;;  %v889_v46 = vmul.f32 1.442695, %v860_v2 }
 0x2b1   :  { %v931_v14 = vsel %vm798_vm1, %v1991_v45, 0.0 }
 0x2b2   :  { %1340 = vpow2.f32 %v889_v46  ;;  %932 = vadd.xlane.f32.xlu0 %v931_v14 }
 0x2b4   :  { %v819_v47 = vpop.xlane.xlu2 %818 }
 0x2b5   :  { %v853_v50 = vsub.f32 %v1921_v5, %v819_v47 }
 0x2b7   :  { %v875_v52 = vmul.f32 1.442695, %v853_v50 }
 0x2b8   :  { %v1996_v53 = vpop.eup %1340 }
 0x2b9   :  { %1342 = vpow2.f32 %v875_v52  ;;  %v934_v1 = vsel %vm798_vm1, %v1996_v53, 0.0 }
 0x2ba   :  { %935 = vadd.xlane.f32.xlu1 %v934_v1 }
 0x2bc   :  { %v822_v40 = vpop.xlane.xlu0 %821 }
 0x2bd   :  { %v854_v54 = vsub.f32 %v1926_v18, %v822_v40 }
 0x2bf   :  { %v2001_v41 = vpop.eup %1342  ;;  %v877_v55 = vmul.f32 1.442695, %v854_v54 }
 0x2c0   :  { %v913_v56 = vsel %vm798_vm1, %v2001_v41, 0.0 }
 0x2c1   :  { %1344 = vpow2.f32 %v877_v55  ;;  %914 = vadd.xlane.f32.xlu0 %v913_v56 }
 0x2c7   :  { %v2005_v5 = vpop.eup %1344  ;;  %v906_v59 = vpop.xlane.xlu0 %905 }
 0x2c8   :  { %v916_v57 = vsel %vm798_vm1, %v2005_v5, 0.0  ;;  %1346 = vrcp.f32 %v906_v59 }
 0x2c9   :  { %917 = vadd.xlane.f32.xlu1 %v916_v57 }
 0x2ce   :  { %v1347_v18 = vpop.eup %1346 }
 0x2cf   :  { %v962_v0 = vmul.f32 %v1347_v18, %v1930_v51 }
 0x2db   :  { %v843_v60 = vpop.xlane.xlu1 %842 }
 0x2dc   :  { %v861_v61 = vsub.f32 %v1935_v48, %v843_v60 }
 0x2de   :  { %v891_v63 = vmul.f32 1.442695, %v861_v61 }
 0x2e0   :  { %1348 = vpow2.f32 %v891_v63 }
 0x2e2   :  { %984 = vrot.lane.b32.xlu1 %v962_v0, %s1417_s4 }
 0x2e3   :  { %v846_v58 = vpop.xlane.xlu2 %845  ;;  %v825_v4 = vpop.xlane.xlu1 %824 }
 0x2e4   :  { %v862_v6 = vsub.f32 %v1945_v3, %v846_v58  ;;  %v855_v15 = vsub.f32 %v1941_v12, %v825_v4 }
 0x2e6   :  { %v2013_v7 = vpop.eup %1348  ;;  %v893_v8 = vmul.f32 1.442695, %v862_v6  ;;  %v879_v10 = vmul.f32 1.442695, %v855_v15 }
 0x2e7   :  { %v937_v48 = vsel %vm798_vm1, %v2013_v7, 0.0 }
 0x2e8   :  { %1350 = vpow2.f32 %v893_v8  ;;  %938 = vadd.xlane.f32.xlu2 %v937_v48 }
 0x2e9   :  { %1352 = vpow2.f32 %v879_v10 }
 0x2eb   :  { %v828_v11 = vpop.xlane.xlu2 %827  ;;  %v2024_v3 = vpop.xlane.xlu1 %896 }
 0x2ec   :  { %v856_v51 = vsub.f32 %v1953_v62, %v828_v11 }
 0x2ee   :  { %v2018_v9 = vpop.eup %1350  ;;  %v881_v17 = vmul.f32 1.442695, %v856_v51 }
 0x2ef   :  { %v2020_v19 = vpop.eup %1352  ;;  %v940_v12 = vsel %vm798_vm1, %v2018_v9, 0.0 }
 0x2f0   :  { %1354 = vpow2.f32 %v881_v17  ;;  %941 = vadd.xlane.f32.xlu0 %v940_v12  ;;  %v919_v20 = vsel %vm798_vm1, %v2020_v19, 0.0 }
 0x2f1   :  { %920 = vadd.xlane.f32.xlu2 %v919_v20 }
 0x2f3   :  { %v903_v43 = vpop.xlane.xlu2 %902  ;;  %v900_v13 = vpop.xlane.xlu1 %899 }
 0x2f4   :  { %1356 = vrcp.f32 %v900_v13 }
 0x2f5   :  { %1358 = vrcp.f32 %v903_v43 }
 0x2f6   :  { %v2028_v21 = vpop.eup %1354 }
 0x2f7   :  { %v922_v62 = vsel %vm798_vm1, %v2028_v21, 0.0 }
 0x2f8   :  { %923 = vadd.xlane.f32.xlu0 %v922_v62 }
 0x2fa   :  { %v1357_v25 = vpop.eup %1356 }
 0x2fb   :  { %v930_v24 = vpop.xlane.xlu2 %929  ;;  %v927_v26 = vpop.xlane.xlu1 %926  ;;  %v960_v29 = vmul.f32 %v1357_v25, %v1963_v22 }
 0x2fc   :  { %1360 = vrcp.f32 %v930_v24  ;;  %v1359_v42 = vpop.eup %1358 }
 0x2fd   :  { %1362 = vrcp.f32 %v927_v26  ;;  %v961_v30 = vmul.f32 %v1359_v42, %v1965_v23 }
 0x302   :  { %v1361_v31 = vpop.eup %1360 }
 0x303   :  { %v909_v32 = vpop.xlane.xlu1 %908  ;;  %v1363_v34 = vpop.eup %1362  ;;  %v970_v35 = vmul.f32 %v1361_v31, %v1974_v28 }
 0x304   :  { %v969_v37 = vmul.f32 %v1363_v34, %v1972_v27 }
 0x306   :  { %v912_v49 = vpop.xlane.xlu2 %911 }
 0x307   :  { %1364 = vrcp.f32 %v912_v49 }
 0x308   :  { %1366 = vrcp.f32 %v909_v32 }
 0x309   :  { %976 = vrot.lane.b32.xlu2 %v960_v29, %s1418_s24 }
 0x30c   :  { %980 = vrot.lane.b32.xlu0 %v961_v30, %s1419_s25 }
 0x30d   :  { %v1365_v22 = vpop.eup %1364 }
 0x30e   :  { %v1367_v38 = vpop.eup %1366  ;;  %v964_v23 = vmul.f32 %v1365_v22, %v1985_v36 }
 0x30f   :  { %v963_v39 = vmul.f32 %v1367_v38, %v1981_v33 }
 0x311   :  { %1016 = vrot.lane.b32.xlu2 %v970_v35, %s1420_s26 }
 0x314   :  { %1012 = vrot.lane.b32.xlu0 %v969_v37, %s1421_s27 }
 0x319   :  { %992 = vrot.lane.b32.xlu2 %v964_v23, %s1422_s28 }
 0x31c   :  { %988 = vrot.lane.b32.xlu0 %v963_v39, %s1423_s29 }
 0x325   :  { %v933_v44 = vpop.xlane.xlu0 %932 }
 0x326   :  { %1368 = vrcp.f32 %v933_v44 }
 0x32c   :  { %v1369_v28 = vpop.eup %1368 }
 0x32d   :  { %v971_v2 = vmul.f32 %v1369_v28, %v1991_v45  ;;  %v936_v27 = vpop.xlane.xlu1 %935 }
 0x32f   :  { %1020 = vrot.lane.b32.xlu1 %v971_v2, %s1424_s30 }
 0x334   :  { %v915_v46 = vpop.xlane.xlu0 %914 }
 0x335   :  { %1370 = vrcp.f32 %v915_v46 }
 0x33b   :  { %v1371_v14 = vpop.eup %1370 }
 0x33c   :  { %v918_v47 = vpop.xlane.xlu1 %917  ;;  %v965_v36 = vmul.f32 %v1371_v14, %v2001_v41 }
 0x33d   :  { %1372 = vrcp.f32 %v918_v47 }
 0x33e   :  { %996 = vrot.lane.b32.xlu1 %v965_v36, %s1425_s6  ;;  %1374 = vrcp.f32 %v936_v27 }
 0x343   :  { %v1373_v33 = vpop.eup %1372 }
 0x344   :  { %v966_v50 = vmul.f32 %v1373_v33, %v2005_v5  ;;  %v1375_v52 = vpop.eup %1374 }
 0x345   :  { %v972_v45 = vmul.f32 %v1375_v52, %v1996_v53 }
 0x346   :  { %1000 = vrot.lane.b32.xlu0 %v966_v50, %s1426_s7 }
 0x34e   :  { %1024 = vrot.lane.b32.xlu0 %v972_v45, %s1427_s8 }
 0x354   :  { %v985_v0 = vpop.permute.xlu1 %984 }
 0x35b   :  { %v939_v1 = vpop.xlane.xlu2 %938 }
 0x363   :  { %v942_v40 = vpop.xlane.xlu0 %941 }
 0x364   :  { %v921_v54 = vpop.xlane.xlu2 %920 }
 0x365   :  { %1376 = vrcp.f32 %v921_v54 }
 0x366   :  { %1378 = vrcp.f32 %v939_v1 }
 0x36b   :  { %v1377_v55 = vpop.eup %1376  ;;  %v924_v41 = vpop.xlane.xlu0 %923 }
 0x36c   :  { %1380 = vrcp.f32 %v924_v41  ;;  %v967_v56 = vmul.f32 %v1377_v55, %v2020_v19  ;;  %v1379_v5 = vpop.eup %1378  ;;  %v977_v63 = vpop.permute.xlu2 %976 }
 0x36d   :  { %1382 = vrcp.f32 %v942_v40  ;;  %v973_v53 = vmul.f32 %v1379_v5, %v2013_v7 }
 0x36e   :  { %1004 = vrot.lane.b32.xlu2 %v967_v56, %s1428_s9  ;;  %1384 = vrcp.f32 %v2024_v3 }
 0x372   :  { %v1381_v57 = vpop.eup %1380 }
 0x373   :  { %v968_v59 = vmul.f32 %v1381_v57, %v2028_v21  ;;  %v1383_v60 = vpop.eup %1382 }
 0x374   :  { %v974_v61 = vmul.f32 %v1383_v60, %v2018_v9  ;;  %v1017_v4 = vpop.permute.xlu2 %1016  ;;  %v1385_v6 = vpop.eup %1384 }
 0x375   :  { %1008 = vrot.lane.b32.xlu1 %v968_v59, %s1429_s1  ;;  %v959_v7 = vmul.f32 %v1385_v6, %v1955_v16 }
 0x376   :  { %1028 = vrot.lane.b32.xlu2 %v973_v53, %s1430_s10 }
 0x377   :  { %v1035_v10 = vsel %vm798_vm1, %v959_v7, %v977_v63 }
 0x37c   :  { %v993_v48 = vpop.permute.xlu2 %992 }
 0x37d   :  { %1032 = vrot.lane.b32.xlu1 %v974_v61, %s1431_s11 }
 0x37e   :  { %v981_v18 = vpop.permute.xlu0 %980 }
 0x37f   :  { %v1037_v11 = vsel %vm1036_vm3, %v1035_v10, %v981_v18 }
 0x380   :  { %v1039_v9 = vsel %vm1038_vm4, %v1037_v11, %v985_v0 }
 0x386   :  { %v1013_v58 = vpop.permute.xlu0 %1012 }
 0x38e   :  { %v989_v8 = vpop.permute.xlu0 %988 }
 0x38f   :  { %v1040_v17 = vsel %vm684_vm2, %v1039_v9, %v989_v8  ;;  %vm1059_vm2 = vcmask 916480  }
 0x390   :  { %v1042_v12 = vsel %vm1041_vm5, %v1040_v17, %v993_v48 }
 0x3a1   :  { %v1021_v15 = vpop.permute.xlu1 %1020 }
 0x3b0   :  { %v997_v51 = vpop.permute.xlu1 %996 }
 0x3b1   :  { %v1044_v20 = vsel %vm1043_vm6, %v1042_v12, %v997_v51 }
 0x3b8   :  { %v1001_v19 = vpop.permute.xlu0 %1000 }
 0x3b9   :  { %v1046_v16 = vsel %vm1045_vm7, %v1044_v20, %v1001_v19 }
 0x3c0   :  { %v1025_v25 = vpop.permute.xlu0 %1024 }
 0x3c8   :  { %v1005_v3 = vpop.permute.xlu2 %1004 }
 0x3c9   :  { %v1048_v21 = vsel %vm1047_vm8, %v1046_v16, %v1005_v3 }
 0x3d0   :  { %v1029_v29 = vpop.permute.xlu2 %1028 }
 0x3e7   :  { %v1009_v62 = vpop.permute.xlu1 %1008 }
 0x3e8   :  { %v1050_v43 = vsel %vm1049_vm9, %v1048_v21, %v1009_v62 }
 0x3e9   :  { %v1052_v13 = vsel %vm1051_vm10, %v1050_v43, %v1013_v58 }
 0x3ea   :  { %v1054_v24 = vsel %vm1053_vm11, %v1052_v13, %v1017_v4 }
 0x3eb   :  { %v1056_v26 = vsel %vm1055_vm12, %v1054_v24, %v1021_v15 }
 0x3ec   :  { %v1058_v42 = vsel %vm1057_vm13, %v1056_v26, %v1025_v25 }
 0x3ed   :  { %v1060_v30 = vsel %vm1059_vm2, %v1058_v42, %v1029_v29 }
 0x3ef   :  { %v1033_v49 = vpop.permute.xlu1 %1032 }
 0x3f0   :  { %v1062_v31 = vsel %vm1061_vm14, %v1060_v30, %v1033_v49 }
 0x3f1   :  { %1063 = vst [vmem:[#allocation2] sm:$0xff] %v1062_v31 }
 0x3f2   :  { %1074 = dma.vmem_to_hbm [thread:$0]  %s1070_s13, 128, %s1072_s15, [#allocation3]  }
 0x3f3   :  { %1410 = dma.done.wait [#allocation3], 128  }
 0x3f4   :  { %1411 = vsyncadd [#allocation3], 4294967168 }
 0x3f5   :  { %1079 = vsyncpa [#allocation3], 1 }

</bundles_post_ra>
